<compile_context>
chip_gen: v5e
topology: v5e:2x2
jax: 0.10.0
libtpu: 0.0.40
codegen_flags: <defaults>
</compile_context>

<pallas_src>
import functools

import jax
import jax.numpy as jnp
from jax import lax
from jax.experimental import pallas as pl
from jax.experimental.pallas import tpu as pltpu


def _soft_dice_kernel(inp_ref, tgt_ref, num_ref, den_ref, *, ignore_index):
    """Blocks: inp (1, C, TS), tgt (1, 1, TS); outputs num/den (1, 1, C, 1).

    Outputs are resident across the (arbitrary) spatial-reduction grid axis.
    """
    @pl.when(pl.program_id(2) == 0)
    def _init():
        num_ref[...] = jnp.zeros_like(num_ref)
        den_ref[...] = jnp.zeros_like(den_ref)

    x = inp_ref[0].astype(jnp.float32)                  # (C, TS) upcast per tile
    t = tgt_ref[0]                                      # (1, TS) int32 labels

    is_ignored = t == ignore_index                      # (1, TS)
    cls = lax.broadcasted_iota(jnp.int32, x.shape, 0)   # (C, TS) class ids
    # Exact 0/1 one-hot with ignored pixels already zeroed (robust even if
    # ignore_index happened to be a valid class id).
    onehot = (t == cls) & jnp.logical_not(is_ignored)   # (C, TS) bool

    # numerator term: input * one_hot  ->  select instead of mul.
    num_part = 2.0 * jnp.sum(jnp.where(onehot, x, 0.0), axis=-1, keepdims=True)
    # denominator term: masked x^2 + one_hot count (tt*tt == tt for 0/1 tt).
    x_sq = jnp.where(is_ignored, 0.0, x * x)            # (C, TS)
    den_part = jnp.sum(x_sq + onehot.astype(jnp.float32),
                       axis=-1, keepdims=True)          # (C, 1)

    num_ref[0, 0] += num_part
    den_ref[0, 0] += den_part


def soft_dice_loss(inputs, target, num_class, epsilon=1e-7, ignore_index=-1,
                   tile_s=None):
    """Pallas implementation of SoftDiceLoss.forward."""
    N, C, H, W = inputs.shape
    assert C == num_class, "channel dim must equal num_class"
    S = H * W

    inp = inputs.reshape(N, C, S)                       # keep native dtype (bf16 ok)
    tgt = target.reshape(N, 1, S).astype(jnp.int32)

    # --- choose spatial tile TS: multiple of 128 lanes, one input tile ~<= 2 MiB
    #     so the double-buffered footprint fits every generation's default
    #     scoped VMEM (16 MiB v5e, 32 MiB v6e/v7x; v7x physical VMEM 64 MiB).
    itemsize = jnp.dtype(inp.dtype).itemsize
    if tile_s is None:
        ts = min(16384, max(512, (2 * 1024 * 1024) // max(1, C * itemsize)))
    else:
        ts = int(tile_s)
    ts = max(128, (ts // 128) * 128)
    ts = min(ts, ((S + 127) // 128) * 128)              # don't over-pad tiny inputs

    total_steps = pl.cdiv(S, ts)
    # v7x has 2 TensorCores: if the batch axis alone can't feed both, split the
    # spatial reduction into 2 parallel super-chunks (partials summed below).
    nsplit = 2 if (N < 2 and total_steps >= 2) else 1
    total_steps = pl.cdiv(total_steps, nsplit) * nsplit
    steps_per_split = total_steps // nsplit
    s_pad = total_steps * ts

    if s_pad != S:
        # Pad with (x = 0, target = ignore_index): contributes exactly zero.
        inp = jnp.pad(inp, ((0, 0), (0, 0), (0, s_pad - S)))
        tgt = jnp.pad(tgt, ((0, 0), (0, 0), (0, s_pad - S)),
                      constant_values=ignore_index)

    kernel = functools.partial(_soft_dice_kernel, ignore_index=ignore_index)

    num, den = pl.pallas_call(
        kernel,
        out_shape=(jax.ShapeDtypeStruct((N, nsplit, C, 1), jnp.float32),
                   jax.ShapeDtypeStruct((N, nsplit, C, 1), jnp.float32)),
        grid=(N, nsplit, steps_per_split),
        in_specs=[
            # If profiling at production sizes shows exposed DMA, add
            # pipeline_mode=pl.Buffered(3) here for deeper prefetch.
            pl.BlockSpec((1, C, ts),
                         lambda n, p, s: (n, 0, p * steps_per_split + s)),
            pl.BlockSpec((1, 1, ts),
                         lambda n, p, s: (n, 0, p * steps_per_split + s)),
        ],
        out_specs=(
            pl.BlockSpec((1, 1, C, 1), lambda n, p, s: (n, p, 0, 0)),
            pl.BlockSpec((1, 1, C, 1), lambda n, p, s: (n, p, 0, 0)),
        ),
        compiler_params=pltpu.CompilerParams(
            dimension_semantics=("parallel", "parallel", "arbitrary")),
    )(inp, tgt)

    num = jnp.sum(num[..., 0], axis=1)                  # (N, C): sum over splits
    den = jnp.sum(den[..., 0], axis=1)                  # (N, C)
    return 1.0 - jnp.mean(num / (den + epsilon))


def soft_dice_loss_ref(inputs, target, num_class, epsilon=1e-7, ignore_index=-1):
    """Pure-JAX reference mirroring the PyTorch semantics."""
    mask = target == ignore_index                       # (N, H, W)
    t0 = jnp.where(mask, 0, target)
    tt = jax.nn.one_hot(t0, num_class, axis=1, dtype=jnp.float32)  # (N, C, H, W)
    maskf = mask[:, None, :, :].astype(jnp.float32)
    tt = tt * (1.0 - maskf)
    x = inputs.astype(jnp.float32) * (1.0 - maskf)
    num = 2.0 * jnp.sum(x * tt, axis=(-1, -2))
    den = jnp.sum(x * x + tt * tt, axis=(-1, -2))
    return 1.0 - jnp.mean(num / (den + epsilon))


if __name__ == "__main__":
    key = jax.random.PRNGKey(0)

    def make_case(k, N, C, H, W, dtype):
        k_inp, k_tgt, k_ign = jax.random.split(k, 3)
        x = jax.random.normal(k_inp, (N, C, H, W), dtype=jnp.float32).astype(dtype)
        t = jax.random.randint(k_tgt, (N, H, W), 0, C, dtype=jnp.int32)
        ign = jax.random.uniform(k_ign, (N, H, W)) < 0.1
        t = jnp.where(ign, -1, t)
        return x, t

    k1, k2 = jax.random.split(key)

    # Case 1: small NCHW f32 — batch axis feeds the grid, single spatial step.
    x1, t1 = make_case(k1, 2, 4, 16, 16, jnp.float32)
    loss1 = jax.block_until_ready(soft_dice_loss(x1, t1, num_class=4))
    ref1 = jax.block_until_ready(soft_dice_loss_ref(x1, t1, num_class=4))
    assert jnp.allclose(loss1, ref1, rtol=1e-4, atol=1e-4), (loss1, ref1)

    # Case 2: N=1, bf16 logits, ragged spatial size with a small forced tile so
    # the multi-step accumulation, 2-way parallel split (v7x megacore path) and
    # the ignore-padding path are all exercised.
    x2, t2 = make_case(k2, 1, 5, 24, 24, jnp.bfloat16)
    loss2 = jax.block_until_ready(soft_dice_loss(x2, t2, num_class=5, tile_s=256))
    ref2 = jax.block_until_ready(soft_dice_loss_ref(x2, t2, num_class=5))
    assert jnp.allclose(loss2, ref2, rtol=1e-4, atol=1e-4), (loss2, ref2)

    print("KERNEL_OK")
</pallas_src>

<mosaic_0001>
module attributes {stable_mosaic.version = 11 : i64} {
  func.func @_soft_dice_kernel(%arg0: i32, %arg1: i32, %arg2: i32, %arg3: memref<1x4x256xf32, #tpu.memory_space<vmem>>, %arg4: memref<1x1x256xi32, #tpu.memory_space<vmem>>, %arg5: memref<1x1x4x1xf32, #tpu.memory_space<vmem>>, %arg6: memref<1x1x4x1xf32, #tpu.memory_space<vmem>>) attributes {dimension_semantics = [#tpu.dimension_semantics<parallel>, #tpu.dimension_semantics<parallel>, #tpu.dimension_semantics<arbitrary>], iteration_bounds = array<i64: 2, 1, 1>, scalar_prefetch = 0 : i64, scratch_operands = 0 : i64, tpu.core_type = #tpu.core_type<tc>, window_params = [{transform_indices = @transform_0, window_bounds = array<i64: 1, 4, 256>}, {transform_indices = @transform_1, window_bounds = array<i64: 1, 1, 256>}, {transform_indices = @transform_2, window_bounds = array<i64: 1, 1, 4, 1>}, {transform_indices = @transform_3, window_bounds = array<i64: 1, 1, 4, 1>}]} {
    %c0_i32 = arith.constant 0 : i32
    %0 = arith.cmpi eq, %arg2, %c0_i32 : i32
    %1 = arith.extui %0 : i1 to i32
    %c0_i32_0 = arith.constant 0 : i32
    %2 = arith.cmpi ne, %1, %c0_i32_0 : i32
    scf.if %2 {
      %cst_27 = arith.constant 0.000000e+00 : f32
      %43 = vector.broadcast %cst_27 : f32 to vector<1x1x4x1xf32>
      %c0_28 = arith.constant 0 : index
      %c0_29 = arith.constant 0 : index
      %c0_30 = arith.constant 0 : index
      %c0_31 = arith.constant 0 : index
      %44 = vector.load %arg5[%c0_28, %c0_29, %c0_30, %c0_31] : memref<1x1x4x1xf32, #tpu.memory_space<vmem>>, vector<1x1x4x1xf32>
      tpu.vector_store %arg5[%c0_28, %c0_29, %c0_30, %c0_31], %43 {strides = array<i32>} : memref<1x1x4x1xf32, #tpu.memory_space<vmem>>, vector<1x1x4x1xf32>,
      %cst_32 = arith.constant 0.000000e+00 : f32
      %45 = vector.broadcast %cst_32 : f32 to vector<1x1x4x1xf32>
      %c0_33 = arith.constant 0 : index
      %c0_34 = arith.constant 0 : index
      %c0_35 = arith.constant 0 : index
      %c0_36 = arith.constant 0 : index
      %46 = vector.load %arg6[%c0_33, %c0_34, %c0_35, %c0_36] : memref<1x1x4x1xf32, #tpu.memory_space<vmem>>, vector<1x1x4x1xf32>
      tpu.vector_store %arg6[%c0_33, %c0_34, %c0_35, %c0_36], %45 {strides = array<i32>} : memref<1x1x4x1xf32, #tpu.memory_space<vmem>>, vector<1x1x4x1xf32>,
    } else {
    }
    %c0 = arith.constant 0 : index
    %c0_1 = arith.constant 0 : index
    %c0_2 = arith.constant 0 : index
    %3 = vector.load %arg3[%c0, %c0_1, %c0_2] : memref<1x4x256xf32, #tpu.memory_space<vmem>>, vector<1x4x256xf32>
    %4 = vector.shape_cast %3 : vector<1x4x256xf32> to vector<4x256xf32>
    %c0_3 = arith.constant 0 : index
    %c0_4 = arith.constant 0 : index
    %c0_5 = arith.constant 0 : index
    %5 = vector.load %arg4[%c0_3, %c0_4, %c0_5] : memref<1x1x256xi32, #tpu.memory_space<vmem>>, vector<1x1x256xi32>
    %6 = vector.shape_cast %5 : vector<1x1x256xi32> to vector<1x256xi32>
    %c-1_i32 = arith.constant -1 : i32
    %7 = vector.broadcast %c-1_i32 : i32 to vector<1x256xi32>
    %8 = arith.cmpi eq, %6, %7 : vector<1x256xi32>
    %9 = tpu.iota {dimensions = array<i32: 0>} : vector<4x256xi32>
    %10 = vector.broadcast %6 : vector<1x256xi32> to vector<4x256xi32>
    %11 = arith.cmpi eq, %10, %9 : vector<4x256xi32>
    %cst = arith.constant dense<true> : vector<1x256xi1>
    %12 = arith.xori %8, %cst : vector<1x256xi1>
    %13 = vector.broadcast %12 : vector<1x256xi1> to vector<4x256xi1>
    %14 = arith.andi %11, %13 : vector<4x256xi1>
    %cst_6 = arith.constant 0.000000e+00 : f32
    %15 = vector.broadcast %cst_6 : f32 to vector<4x256xf32>
    %16 = arith.select %14, %4, %15 : vector<4x256xi1>, vector<4x256xf32>
    %cst_7 = arith.constant dense<0.000000e+00> : vector<4xf32>
    %17 = vector.multi_reduction <add>, %16, %cst_7 [1] : vector<4x256xf32> to vector<4xf32>
    %18 = vector.shape_cast %17 : vector<4xf32> to vector<4x1xf32>
    %cst_8 = arith.constant 2.000000e+00 : f32
    %19 = vector.broadcast %cst_8 : f32 to vector<4x1xf32>
    %20 = arith.mulf %19, %18 : vector<4x1xf32>
    %21 = arith.mulf %4, %4 : vector<4x256xf32>
    %cst_9 = arith.constant 0.000000e+00 : f32
    %22 = vector.shape_cast %8 : vector<1x256xi1> to vector<1x256xi1>
    %23 = vector.broadcast %22 : vector<1x256xi1> to vector<4x256xi1>
    %24 = vector.broadcast %cst_9 : f32 to vector<4x256xf32>
    %25 = arith.select %23, %24, %21 : vector<4x256xi1>, vector<4x256xf32>
    %26 = arith.extui %14 : vector<4x256xi1> to vector<4x256xi32>
    %27 = arith.sitofp %26 : vector<4x256xi32> to vector<4x256xf32>
    %28 = arith.addf %25, %27 : vector<4x256xf32>
    %cst_10 = arith.constant dense<0.000000e+00> : vector<4xf32>
    %29 = vector.multi_reduction <add>, %28, %cst_10 [1] : vector<4x256xf32> to vector<4xf32>
    %30 = vector.shape_cast %29 : vector<4xf32> to vector<4x1xf32>
    %c0_11 = arith.constant 0 : index
    %c0_12 = arith.constant 0 : index
    %c0_13 = arith.constant 0 : index
    %c0_14 = arith.constant 0 : index
    %31 = vector.load %arg5[%c0_11, %c0_12, %c0_13, %c0_14] : memref<1x1x4x1xf32, #tpu.memory_space<vmem>>, vector<1x1x4x1xf32>
    %32 = vector.shape_cast %31 : vector<1x1x4x1xf32> to vector<4x1xf32>
    %33 = arith.addf %32, %20 : vector<4x1xf32>
    %c0_15 = arith.constant 0 : index
    %c0_16 = arith.constant 0 : index
    %c0_17 = arith.constant 0 : index
    %c0_18 = arith.constant 0 : index
    %34 = vector.load %arg5[%c0_15, %c0_16, %c0_17, %c0_18] : memref<1x1x4x1xf32, #tpu.memory_space<vmem>>, vector<1x1x4x1xf32>
    %35 = vector.shape_cast %34 : vector<1x1x4x1xf32> to vector<4x1xf32>
    %36 = vector.shape_cast %33 : vector<4x1xf32> to vector<1x1x4x1xf32>
    tpu.vector_store %arg5[%c0_15, %c0_16, %c0_17, %c0_18], %36 {strides = array<i32>} : memref<1x1x4x1xf32, #tpu.memory_space<vmem>>, vector<1x1x4x1xf32>,
    %c0_19 = arith.constant 0 : index
    %c0_20 = arith.constant 0 : index
    %c0_21 = arith.constant 0 : index
    %c0_22 = arith.constant 0 : index
    %37 = vector.load %arg6[%c0_19, %c0_20, %c0_21, %c0_22] : memref<1x1x4x1xf32, #tpu.memory_space<vmem>>, vector<1x1x4x1xf32>
    %38 = vector.shape_cast %37 : vector<1x1x4x1xf32> to vector<4x1xf32>
    %39 = arith.addf %38, %30 : vector<4x1xf32>
    %c0_23 = arith.constant 0 : index
    %c0_24 = arith.constant 0 : index
    %c0_25 = arith.constant 0 : index
    %c0_26 = arith.constant 0 : index
    %40 = vector.load %arg6[%c0_23, %c0_24, %c0_25, %c0_26] : memref<1x1x4x1xf32, #tpu.memory_space<vmem>>, vector<1x1x4x1xf32>
    %41 = vector.shape_cast %40 : vector<1x1x4x1xf32> to vector<4x1xf32>
    %42 = vector.shape_cast %39 : vector<4x1xf32> to vector<1x1x4x1xf32>
    tpu.vector_store %arg6[%c0_23, %c0_24, %c0_25, %c0_26], %42 {strides = array<i32>} : memref<1x1x4x1xf32, #tpu.memory_space<vmem>>, vector<1x1x4x1xf32>,
    return
  }
  func.func @transform_0(%arg0: i32, %arg1: i32, %arg2: i32) -> (i32, i32, i32) {
    %c1_i32 = arith.constant 1 : i32
    %0 = arith.muli %arg1, %c1_i32 : i32
    %1 = arith.addi %0, %arg2 : i32
    %c0_i32 = arith.constant 0 : i32
    %c0_i32_0 = arith.constant 0 : i32
    return %arg0, %c0_i32, %1 : i32, i32, i32
  }
  func.func @transform_1(%arg0: i32, %arg1: i32, %arg2: i32) -> (i32, i32, i32) {
    %c1_i32 = arith.constant 1 : i32
    %0 = arith.muli %arg1, %c1_i32 : i32
    %1 = arith.addi %0, %arg2 : i32
    %c0_i32 = arith.constant 0 : i32
    %c0_i32_0 = arith.constant 0 : i32
    return %arg0, %c0_i32, %1 : i32, i32, i32
  }
  func.func @transform_2(%arg0: i32, %arg1: i32, %arg2: i32) -> (i32, i32, i32, i32) {
    %c0_i32 = arith.constant 0 : i32
    %c0_i32_0 = arith.constant 0 : i32
    %c0_i32_1 = arith.constant 0 : i32
    return %arg0, %arg1, %c0_i32, %c0_i32_0 : i32, i32, i32, i32
  }
  func.func @transform_3(%arg0: i32, %arg1: i32, %arg2: i32) -> (i32, i32, i32, i32) {
    %c0_i32 = arith.constant 0 : i32
    %c0_i32_0 = arith.constant 0 : i32
    %c0_i32_1 = arith.constant 0 : i32
    return %arg0, %arg1, %c0_i32, %c0_i32_0 : i32, i32, i32, i32
  }
}

</mosaic_0001>

<bundles_post_ra>
// kernel: tpu_custom_call.1
= control target key start
LH: loop header
LB: loop body
LE: loop exit
PB: predicated region body
PF: predicated region fallthrough
CT: control target
= control target key end

     0   :  { %9 = vsyncpa [#allocation3], 0  ;;  %s902_s0 = inlined_call_operand.hbm [shape: f32[2,4,256], index: 0, kind: input, shape index: {}]   ;;  %s903_s1 = inlined_call_operand.hbm [shape: s32[2,1,256], index: 1, kind: input, shape index: {}]   ;;  %s904_s2 = inlined_call_operand.vmem [shape: f32[2,1,4,1], index: 2, kind: output, shape index: {0}]   ;;  %s905_s3 = inlined_call_operand.vmem [shape: f32[2,1,4,1], index: 3, kind: output, shape index: {1}]  }
   0x1   :  { %11 = vsyncpa [#allocation3 + $0x1], 0 }
   0x2   :  { %12 = vsyncpa [#allocation5], 0 }
   0x3   :  { %14 = vsyncpa [#allocation5 + $0x1], 0  ;;  %s741_s12 = smov 0   ;;  %s743_s13 = smov 0  }
   0x4   :  { %s745_s14 = smov 0   ;;  %s747_s15 = smov 0  }
   0x5   :  { %s749_s16 = smov 0   ;;  %s751_s17 = smov 0  }
   0x6 LB: > { %s520_s18 = sadd.s32 4294967295, %s716_s17   ;;  %s39_s19 = sadd.s32 1, %s712_s16  ;;  %s716_s17 = sphi %s751_s17, %s20_s17   ;;  %s712_s16 = sphi %s749_s16, %s921_s16   ;;  %s708_s15 = sphi %s747_s15, %s920_s15   ;;  %s704_s14 = sphi %s745_s14, %s919_s14   ;;  %s700_s13 = sphi %s743_s13, %s918_s13   ;;  %s696_s12 = sphi %s741_s12, %s917_s12  }
   0x7   : > { %p41_p0 = scmp.ge.s32.totalorder %s39_s19, 2  ;;  %s50_s20 = sadd.s32 1, %s704_s14 }
   0x8   : > { %p57_p1 = scmp.ne.s32.totalorder %s704_s14, %s700_s13  ;;  %p58_p2 = scmp.eq.s32.totalorder %s716_s17, 0 }
   0x9   : > { %s923_s19 = smov (%p41_p0, %s39_s19), 0  ;;  %p63_p4 = scmp.ne.s32.totalorder %s700_s13, %s696_s12 }
   0xa   : > { %p777_p3 = por %p58_p2, %p57_p1  ;;  %s45_s22 = ssub.s32 %s712_s16, %s923_s19 }
   0xb   : > { %p64_p5 = scmp.eq.s32.totalorder %s520_s18, 0  ;;  %p48_p6 = scmp.eq.s32.totalorder %s45_s22, 0 }
   0xc   : > { %p550_p8 = scmp.lt.s32.totalorder %s716_s17, 2  ;;  %s173_s25 = sand.u32 1, %s704_s14  }
   0xd   : > { %p784_p7 = por %p64_p5, %p63_p4  ;;  %s538_s26 = sshll.u32 %s712_s16, 3 }
   0xe   : > { %s790_s24 = scalar_select %p48_p6, %s704_s14, %s50_s20  }
   0xf   : > { %s524_s27 = sshll.u32 %s173_s25, 3  ;;  %s185_s30 = scalar_lea.hbm %s902_s0, %s538_s26 }
  0x10   : > { %s187_s4 = sshll.u32 %s185_s30, 4  ;;  %s177_s5 = scalar_lea.vmem [#allocation2], %s524_s27  ;;  %s188_s4 = int_to_ptr.hbm [resolvable:$true] %s187_s4 }
  0x11   : > { %s189_s6 = sshll.u32 %s177_s5, 4  ;;  %p799_p9 = pnand %p550_p8, %p777_p3  ;;  %s190_s6 = int_to_ptr.vmem [resolvable:$true] %s189_s6 }
  0x12   : > { %p529_p10 = scmp.ge.s32.totalorder %s716_s17, 1  ;;  %p216_p11 = scmp.lt.s32.totalorder %s716_s17, 3 }
  0x13   : > { %s527_s8 = sshll.u32 %s173_s25, 1  ;;  %s174_s9 = scalar_lea.sflag [#allocation3], %s173_s25 }
  0x14   : > { %546 = dma.hbm_to_vmem [thread:$0]  (!%p799_p9), %s188_s4, 128, %s190_s6, %s174_s9  }
  0x15   : > { %p217_p12 = pnand %p529_p10, %p216_p11  ;;  %s528_s10 = sshll.u32 %s712_s16, 1 }
  0x16   : > { %s200_s11 = scalar_lea.vmem [#allocation4], %s527_s8  ;;  %s207_s21 = scalar_lea.hbm %s903_s1, %s528_s10 }
  0x17   : > { %s211_s12 = sshll.u32 %s200_s11, 4  ;;  %s209_s22 = sshll.u32 %s207_s21, 4  ;;  %s212_s12 = int_to_ptr.vmem [resolvable:$true] %s211_s12  ;;  %s210_s22 = int_to_ptr.hbm [resolvable:$true] %s209_s22 }
  0x18   : > { %s197_s26 = scalar_lea.sflag [#allocation5], %s173_s25  ;;  %220 = sbr.rel (%p217_p12) target bundleno = 175 (0xaf), region = 28 }
  0x19   : > { %549 = dma.hbm_to_vmem [thread:$0]  (!%p799_p9), %s210_s22, 32, %s212_s12, %s197_s26  }
  0x1a   : > { %s222_s27 = sand.u32 (!%p217_p12), 1, %s700_s13  }
  0x1b   : > { %s530_s28 = sshll.u32 (!%p217_p12), %s222_s27, 3  ;;  %s223_s29 = scalar_lea.sflag (!%p217_p12), [#allocation3], %s222_s27 }
  0x1c   : > { %s226_s30 = scalar_lea.vmem (!%p217_p12), [#allocation2], %s530_s28 }
  0x1d   : > { %687 = dma.done.wait (%p784_p7), %s223_s29, 128  }
  0x1e   : > { %689 = vsyncadd (%p784_p7), %s223_s29, 4294967168  ;;  %s531_s4 = sshll.u32 %s222_s27, 1  ;;  %s233_s5 = scalar_lea.sflag [#allocation5], %s222_s27 }
  0x1f   : > { %s236_s6 = scalar_lea.vmem [#allocation4], %s531_s4 }
  0x20   : > { %691 = dma.done.wait (%p784_p7), %s233_s5, 32  }
  0x21   : > { %693 = vsyncadd (%p784_p7), %s233_s5, 4294967264  ;;  %p278_p13 = scmp.lt.s32.totalorder %s708_s15, 1  ;;  %v302_v0 = vlaneseq  ;;  %vm296_vm0 = vcmask 3072   ;;  %v718_v1 = vmov 0.0   ;;  %v299_v2 = vld [vmem:[%s226_s30] sm:$0xff]  ;;  %vm719_vm2 = vmmov 1  }
  0x22   : > { %v300_v3 = vld [vmem:[%s236_s6] sm:$0x3]  ;;  %317 = vst [vmem:[#allocation1] ss:$2 sm:$0xff] %v299_v2  ;;  %v720_v7 = vmov 0   ;;  %v331_v13 = vmul.f32 %v299_v2, %v299_v2  ;;  %vm324_vm9 = vcmask 1043456  }
  0x23   : > { %s925_s15 = smov (!%p278_p13, %s708_s15), 1  ;;  %v303_v4 = vshrl.u32 %v302_v0, 7  ;;  %vm301_vm1 = vcmp.eq.s32.totalorder %v300_v3, 4294967295  ;;  %v304_v5 = vperm.slane %v300_v3, 0  ;;  %v305_v6 = vperm.slane %v300_v3, 1 }
  0x24   : > { %s532_s25 = sshll.u32 %s925_s15, 2  ;;  %vm308_vm3 = vmxor %vm301_vm1, %vm719_vm2  ;;  %v332_v16 = vsel %vm301_vm1, 1, %v720_v7 }
  0x25   : > { %s827_s9 = scalar_lea.vmem %s904_s2, %s532_s25  ;;  %s835_s10 = scalar_lea.vmem %s905_s3, %s532_s25  ;;  %v309_v8 = vsel %vm308_vm3, 1, %v720_v7  ;;  %vm839_vm4 = vcmp.eq.s32.totalorder %v304_v5, %v303_v4  ;;  %vm843_vm5 = vcmp.eq.s32.totalorder %v305_v6, %v303_v4  ;;  %v333_v23 = vperm.slane %v332_v16, 0 }
  0x26   : > { %297 = vst.msk [vmem:[%s827_s9] sm:$0xf] %vm296_vm0, %v718_v1  ;;  %v310_v10 = vperm.slane %v309_v8, 0  ;;  %v311_v11 = vperm.slane %v309_v8, 1  ;;  %v334_v24 = vperm.slane %v332_v16, 1 }
  0x27   : > { %298 = vst.msk [vmem:[%s835_s10] sm:$0xf] %vm296_vm0, %v718_v1  ;;  %vm335_vm11 = vcmp.eq.s32.totalorder %v333_v23, 1 }
  0x28   : > { %vm847_vm6 = vcmp.eq.s32.totalorder %v310_v10, 1  ;;  %vm851_vm7 = vcmp.eq.s32.totalorder %v311_v11, 1  ;;  %vm336_vm12 = vcmp.eq.s32.totalorder %v334_v24, 1 }
  0x29   : > { %vm314_vm8 = vmand %vm839_vm4, %vm847_vm6  ;;  %v318_v17 = vld.sshfl [vmem:[#allocation1] sm:$0xff pattern:$0x75316420]  ;;  %v319_v18 = vld.sshfl [vmem:[#allocation1 + $0x8] sm:$0xff pattern:$0x75316420] }
  0x2a   : > { %vm315_vm10 = vmand %vm843_vm5, %vm851_vm7  ;;  %v322_v19 = vsel %vm314_vm8, %v318_v17, 0.0  ;;  %338 = vst [vmem:[#allocation1] ss:$2 sm:$0xff] %v331_v13  ;;  %v534_v26 = vsel %vm314_vm8, 1.0, %v718_v1 }
  0x2b   : > { %v323_v20 = vsel %vm315_vm10, %v319_v18, 0.0  ;;  %v325_v21 = vsel %vm324_vm9, %v322_v19, 0.0  ;;  %v535_v27 = vsel %vm315_vm10, 1.0, %v718_v1 }
  0x2c   : > { %v326_v22 = vsel %vm324_vm9, %v323_v20, 0.0 }
  0x2d   : > { %v327_v25 = vadd.f32 %v326_v22, %v325_v21  ;;  %v356_v38 = vld [vmem:[%s827_s9] sm:$0xf] }
  0x2e   : > { %v360_v41 = vld [vmem:[%s835_s10] sm:$0xf] }
  0x2f   : > { %328 = vadd.xlane.f32.xlu0 %v327_v25 }
  0x31   : > { %v339_v28 = vld.sshfl [vmem:[#allocation1] sm:$0xff pattern:$0x75316420]  ;;  %v340_v29 = vld.sshfl [vmem:[#allocation1 + $0x8] sm:$0xff pattern:$0x75316420] }
  0x32   : > { %v343_v30 = vsel %vm335_vm11, 0.0, %v339_v28  ;;  %v344_v31 = vsel %vm336_vm12, 0.0, %v340_v29 }
  0x33   : > { %v349_v32 = vadd.f32 %v534_v26, %v343_v30  ;;  %v350_v33 = vadd.f32 %v535_v27, %v344_v31 }
  0x35   : > { %v351_v34 = vsel %vm324_vm9, %v349_v32, 0.0  ;;  %v352_v35 = vsel %vm324_vm9, %v350_v33, 0.0 }
  0x36   : > { %v353_v36 = vadd.f32 %v352_v35, %v351_v34 }
  0x38   : > { %354 = vadd.xlane.f32.xlu0 %v353_v36 }
  0xa2   : > { %v329_v37 = vpop.xlane.xlu0 %328 }
  0xa3   : > { %v330_v39 = vmul.f32 2.0, %v329_v37 }
  0xa5   : > { %v357_v40 = vadd.f32 %v356_v38, %v330_v39 }
  0xa7   : > { %359 = vst.msk [vmem:[%s827_s9] sm:$0xf] %vm296_vm0, %v357_v40 }
  0xab   : > { %v355_v42 = vpop.xlane.xlu0 %354 }
  0xac   : > { %v361_v43 = vadd.f32 %v360_v41, %v355_v42 }
  0xae   : > { %362 = vst.msk [vmem:[%s835_s10] sm:$0xf] %vm296_vm0, %v361_v43 }
  0xaf PF: > { %s20_s17 = sadd.s32 1, %s716_s17   ;;  %s917_s12 = smov %s700_s13 }
  0xb0   : > { %p17_p0 = scmp.ge.s32.totalorder %s20_s17, 4   ;;  %s918_s13 = smov %s704_s14 }
  0xb1   : > { %s919_s14 = smov %s790_s24  ;;  %s920_s15 = smov %s712_s16 }
  0xb2   : > { %s921_s16 = smov %s923_s19  ;;  %19 = sbr.rel (!%p17_p0) target bundleno = 6 (0x6), region = 97 }
  0xb7   :  { %408 = vsyncpa [#allocation3], 1 }
  0xb8   :  { %410 = vsyncpa [#allocation3 + $0x1], 1 }
  0xb9   :  { %411 = vsyncpa [#allocation5], 1 }
  0xba   :  { %413 = vsyncpa [#allocation5 + $0x1], 1 }

</bundles_post_ra>
